<compile_context>
chip_gen: v6e
topology: v6e:2x2x1
jax: 0.10.0
libtpu: 0.0.40
codegen_flags: <defaults>
</compile_context>

<pallas_src>
import functools
import math

import jax
import jax.numpy as jnp
from jax.experimental import pallas as pl
from jax.experimental.pallas import tpu as pltpu


def _standardize_kernel_bias(x_ref, mu_ref, std_ref, o_ref, *, eps):
    # x_ref: (tb, Fp) tile; mu_ref/std_ref: (1, Fp) parameter rows (broadcast).
    # One reciprocal per feature per tile (exact, not approx) -> elementwise
    # work is only a subtract + multiply per element.
    inv = 1.0 / (std_ref[...].astype(jnp.float32) + eps)          # (1, Fp)
    x = x_ref[...].astype(jnp.float32)
    mu = mu_ref[...].astype(jnp.float32)
    o_ref[...] = ((x - mu) * inv).astype(o_ref.dtype)


def _standardize_kernel_nobias(x_ref, std_ref, o_ref, *, eps):
    inv = 1.0 / (std_ref[...].astype(jnp.float32) + eps)          # (1, Fp)
    x = x_ref[...].astype(jnp.float32)
    o_ref[...] = (x * inv).astype(o_ref.dtype)


def _sublane_multiple(dtype) -> int:
    # Second-to-last block dim must be a multiple of this (unless full extent).
    itemsize = jnp.dtype(dtype).itemsize
    return {4: 8, 2: 16, 1: 32}.get(itemsize, 8)


def _pick_lane_fold(B, F):
    """Smallest k with (k*F) % 128 == 0 and B % k == 0, else 1."""
    if F % 128 == 0:
        return 1
    k = math.lcm(F, 128) // F
    if B % k == 0:
        return k
    return 1  # fall back: still correct, just partially masked stores


def _pick_block_rows(B_p, F_p, dtype, sub_mult, target_bytes=2 * 1024 * 1024):
    """~2 MiB tiles, multiple of sub_mult, dividing B_p (or full extent)."""
    itemsize = jnp.dtype(dtype).itemsize
    target = max(sub_mult, (target_bytes // (F_p * itemsize)) // sub_mult * sub_mult)
    if target >= B_p:
        return B_p
    for cand in range(target, sub_mult - 1, -sub_mult):
        if B_p % cand == 0:
            return cand
    return B_p  # no aligned divisor found: single full-extent block (legal)


def standardize(x, std, mu=None, eps=1e-6, block_rows=None):
    """Pallas equivalent of Standardize.forward.

    x   : (B, F) array
    std : (F,) scale parameter
    mu  : (F,) translation parameter or None (bias=False)
    """
    B, F = x.shape
    sub_mult = _sublane_multiple(x.dtype)

    # --- lane-dense packing: fold k rows into one row of width k*F ----------
    k = _pick_lane_fold(B, F)
    B_p, F_p = B // k, k * F
    x_p = x.reshape(B_p, F_p)
    std_p = jnp.tile(std.reshape(-1), (k,)).reshape(1, F_p)
    mu_p = None if mu is None else jnp.tile(mu.reshape(-1), (k,)).reshape(1, F_p)

    # --- tile-row selection --------------------------------------------------
    if block_rows is None:
        block_rows = _pick_block_rows(B_p, F_p, x.dtype, sub_mult)
    assert B_p % block_rows == 0, "block_rows must divide the (packed) batch"
    assert block_rows == B_p or block_rows % sub_mult == 0, (
        f"block_rows must be a multiple of {sub_mult} for dtype {x.dtype} "
        f"(or equal to the full packed batch {B_p})"
    )
    grid = (B_p // block_rows,)

    x_spec = pl.BlockSpec((block_rows, F_p), lambda i: (i, 0))
    p_spec = pl.BlockSpec((1, F_p), lambda i: (0, 0))
    o_spec = pl.BlockSpec((block_rows, F_p), lambda i: (i, 0))

    if mu is not None:
        kernel = functools.partial(_standardize_kernel_bias, eps=eps)
        out_p = pl.pallas_call(
            kernel,
            out_shape=jax.ShapeDtypeStruct((B_p, F_p), x.dtype),
            grid=grid,
            in_specs=[x_spec, p_spec, p_spec],
            out_specs=o_spec,
            compiler_params=pltpu.CompilerParams(
                dimension_semantics=("parallel",)
            ),
        )(x_p, mu_p, std_p)
    else:
        kernel = functools.partial(_standardize_kernel_nobias, eps=eps)
        out_p = pl.pallas_call(
            kernel,
            out_shape=jax.ShapeDtypeStruct((B_p, F_p), x.dtype),
            grid=grid,
            in_specs=[x_spec, p_spec],
            out_specs=o_spec,
            compiler_params=pltpu.CompilerParams(
                dimension_semantics=("parallel",)
            ),
        )(x_p, std_p)

    return out_p.reshape(B, F)


if __name__ == "__main__":
    key = jax.random.PRNGKey(0)
    eps = 1e-6

    # ---- Case 1: module-sized example (B=8, in_features=32) ---------------
    B, F = 8, 32
    x = jax.random.normal(key, (B, F), dtype=jnp.float32)

    # Deterministic params, matching Standardize.reset_parameters():
    #   std = 1, mu = 0   (perturb slightly so the math is non-trivial)
    std = jnp.ones((F,), dtype=jnp.float32) + 0.1 * jnp.arange(F, dtype=jnp.float32) / F
    mu = jnp.zeros((F,), dtype=jnp.float32) + 0.01 * jnp.arange(F, dtype=jnp.float32)

    out = jax.block_until_ready(standardize(x, std, mu=mu, eps=eps))
    ref = (x - mu[None, :]) / (std[None, :] + eps)
    assert out.shape == x.shape and out.dtype == x.dtype
    assert jnp.allclose(out, ref, atol=1e-5, rtol=1e-5)

    # bias=False path
    out_nb = jax.block_until_ready(standardize(x, std, mu=None, eps=eps))
    ref_nb = x / (std[None, :] + eps)
    assert jnp.allclose(out_nb, ref_nb, atol=1e-5, rtol=1e-5)

    # ---- Case 2: exercise the multi-step pipelined grid --------------------
    B2, F2 = 512, 256
    key2, key3 = jax.random.split(jax.random.PRNGKey(0))
    x2 = jax.random.normal(key2, (B2, F2), dtype=jnp.float32)
    std2 = 1.0 + 0.5 * jax.random.uniform(key3, (F2,), dtype=jnp.float32)
    mu2 = 0.1 * jnp.arange(F2, dtype=jnp.float32) / F2

    out2 = jax.block_until_ready(
        standardize(x2, std2, mu=mu2, eps=eps, block_rows=128)  # 4 grid steps
    )
    ref2 = (x2 - mu2[None, :]) / (std2[None, :] + eps)
    assert jnp.allclose(out2, ref2, atol=1e-5, rtol=1e-5)

    print("KERNEL_OK")
</pallas_src>

<mosaic_0001>
module attributes {stable_mosaic.version = 11 : i64} {
  func.func @_standardize_kernel_bias(%arg0: i32, %arg1: memref<2x128xf32, #tpu.memory_space<vmem>>, %arg2: memref<1x128xf32, #tpu.memory_space<vmem>>, %arg3: memref<1x128xf32, #tpu.memory_space<vmem>>, %arg4: memref<2x128xf32, #tpu.memory_space<vmem>>) attributes {dimension_semantics = [#tpu.dimension_semantics<parallel>], iteration_bounds = array<i64: 1>, scalar_prefetch = 0 : i64, scratch_operands = 0 : i64, tpu.core_type = #tpu.core_type<tc>, window_params = [{transform_indices = @transform_0, window_bounds = array<i64: 2, 128>}, {pipeline_mode = #tpu.pipeline_mode<synchronous>, transform_indices = @transform_1, window_bounds = array<i64: 1, 128>}, {pipeline_mode = #tpu.pipeline_mode<synchronous>, transform_indices = @transform_2, window_bounds = array<i64: 1, 128>}, {transform_indices = @transform_3, window_bounds = array<i64: 2, 128>}]} {
    %c0 = arith.constant 0 : index
    %c0_0 = arith.constant 0 : index
    %0 = vector.load %arg3[%c0, %c0_0] : memref<1x128xf32, #tpu.memory_space<vmem>>, vector<1x128xf32>
    %cst = arith.constant 9.99999997E-7 : f32
    %1 = vector.broadcast %cst : f32 to vector<1x128xf32>
    %2 = arith.addf %0, %1 : vector<1x128xf32>
    %cst_1 = arith.constant 1.000000e+00 : f32
    %3 = vector.broadcast %cst_1 : f32 to vector<1x128xf32>
    %4 = arith.divf %3, %2 : vector<1x128xf32>
    %c0_2 = arith.constant 0 : index
    %c0_3 = arith.constant 0 : index
    %5 = vector.load %arg1[%c0_2, %c0_3] : memref<2x128xf32, #tpu.memory_space<vmem>>, vector<2x128xf32>
    %c0_4 = arith.constant 0 : index
    %c0_5 = arith.constant 0 : index
    %6 = vector.load %arg2[%c0_4, %c0_5] : memref<1x128xf32, #tpu.memory_space<vmem>>, vector<1x128xf32>
    %7 = vector.broadcast %6 : vector<1x128xf32> to vector<2x128xf32>
    %8 = arith.subf %5, %7 : vector<2x128xf32>
    %9 = vector.broadcast %4 : vector<1x128xf32> to vector<2x128xf32>
    %10 = arith.mulf %8, %9 : vector<2x128xf32>
    %c0_6 = arith.constant 0 : index
    %c0_7 = arith.constant 0 : index
    %11 = vector.load %arg4[%c0_6, %c0_7] : memref<2x128xf32, #tpu.memory_space<vmem>>, vector<2x128xf32>
    tpu.vector_store %arg4[%c0_6, %c0_7], %10 {strides = array<i32>} : memref<2x128xf32, #tpu.memory_space<vmem>>, vector<2x128xf32>,
    return
  }
  func.func @transform_0(%arg0: i32) -> (i32, i32) {
    %c0_i32 = arith.constant 0 : i32
    %c0_i32_0 = arith.constant 0 : i32
    return %arg0, %c0_i32 : i32, i32
  }
  func.func @transform_1(%arg0: i32) -> (i32, i32) {
    %c0_i32 = arith.constant 0 : i32
    %c0_i32_0 = arith.constant 0 : i32
    %c0_i32_1 = arith.constant 0 : i32
    return %c0_i32, %c0_i32_0 : i32, i32
  }
  func.func @transform_2(%arg0: i32) -> (i32, i32) {
    %c0_i32 = arith.constant 0 : i32
    %c0_i32_0 = arith.constant 0 : i32
    %c0_i32_1 = arith.constant 0 : i32
    return %c0_i32, %c0_i32_0 : i32, i32
  }
  func.func @transform_3(%arg0: i32) -> (i32, i32) {
    %c0_i32 = arith.constant 0 : i32
    %c0_i32_0 = arith.constant 0 : i32
    return %arg0, %c0_i32 : i32, i32
  }
}

</mosaic_0001>

<bundles_post_ra>
// kernel: tpu_custom_call.1
= control target key start
LH: loop header
LB: loop body
LE: loop exit
PB: predicated region body
PF: predicated region fallthrough
CT: control target
= control target key end

     0   :  { %8 = vsyncpa [#allocation3], 0  ;;  %s146_s0 = inlined_call_operand.hbm [shape: f32[2,128], index: 0, kind: input, shape index: {}]   ;;  %s147_s1 = inlined_call_operand.vmem [shape: f32[1,128], index: 1, kind: input, shape index: {}]   ;;  %s148_s2 = inlined_call_operand.vmem [shape: f32[1,128], index: 2, kind: input, shape index: {}]   ;;  %s149_s3 = inlined_call_operand.hbm [shape: f32[2,128], index: 3, kind: output, shape index: {}]  }
   0x1   :  { %9 = vsyncpa [#allocation4], 0  ;;  %s112_s12 = smov [#allocation2]  }
   0x2   :  { %s16_s13 = sshll.u32 %s112_s12, 4  ;;  %s17_s13 = int_to_ptr.vmem [resolvable:$true] %s16_s13 }
   0x3   :  { %s76_s14 = scalar_lea.vmem %s17_s13, 32  ;;  %p81_p1 = scmp.lt.s32.totalorder %s17_s13, %s17_s13 }
   0x4   :  { %p77_p0 = scmp.ne.s32.totalorder %s17_s13, %s76_s14  ;;  %p82_p2 = scmp.lt.s32.totalorder %s76_s14, %s76_s14 }
   0x6   :  { %p83_p3 = por %p82_p2, %p81_p1 }
   0x8   :  { %p84_p4 = pnand %p83_p3, %p77_p0 }
   0xa   :  { %87 = shalt.err (!%p84_p4)
}
   0xb   :  { %19 = dma.hbm_to_vmem [thread:$0]  %s146_s0, 32, %s17_s13, [#allocation3]  }
   0xc   :  { %108 = dma.done.wait [#allocation3], 32  }
   0xd   :  { %109 = vsyncadd [#allocation3], 4294967264  ;;  %v27_v0 = vld [vmem:[%s148_s2] sm:$0x1]  ;;  %v41_v2 = vlaneseq  ;;  %s113_s21 = smov [#allocation5]  }
   0xe   :  { %v28_v1 = vadd.f32 1e-06, %v27_v0  ;;  %v31_v4 = vld [vmem:[#allocation2] sm:$0x3]  ;;  %s54_s0 = sshll.u32 %s113_s21, 4  ;;  %s55_s0 = int_to_ptr.vmem [resolvable:$true] %s54_s0 }
   0xf   :  { %v42_v3 = vshrl.u32 %v41_v2, 7  ;;  %v63_v5 = vld [vmem:[%s147_s1] ss:$0 sm:$0xff]  ;;  %s88_s22 = scalar_lea.vmem %s55_s0, 32  ;;  %p93_p6 = scmp.lt.s32.totalorder %s55_s0, %s55_s0 }
  0x10   :  { %66 = vrcp.f32 %v28_v1  ;;  %v39_v7 = vsub.f32 %v31_v4, %v63_v5  ;;  %p89_p5 = scmp.ne.s32.totalorder %s55_s0, %s88_s22  ;;  %p94_p7 = scmp.lt.s32.totalorder %s88_s22, %s88_s22 }
  0x11   :  { %v43_v6 = vsub.s32 0, %v42_v3 }
  0x12   :  { %p95_p8 = por %p94_p7, %p93_p6 }
  0x14   :  { %p96_p9 = pnand %p95_p8, %p89_p5 }
  0x1d   :  { %v67_v8 = vpop.eup %66 }
  0x1e   :  { %v44_v9 = vrot.slane %v67_v8, %v43_v6 }
  0x20   :  { %v46_v10 = vmul.f32 %v44_v9, %v39_v7 }
  0x22   :  { %47 = vst [vmem:[#allocation5] sm:$0x3] %v46_v10 }
  0x23   :  { %99 = shalt.err (!%p96_p9)
}
  0x24   :  { %57 = dma.vmem_to_hbm [thread:$0]  %s55_s0, 32, %s149_s3, [#allocation4]  }
  0x25   :  { %110 = dma.done.wait [#allocation4], 32  }
  0x26   :  { %111 = vsyncadd [#allocation4], 4294967264 }
  0x27   :  { %61 = vsyncpa [#allocation3], 1 }
  0x28   :  { %62 = vsyncpa [#allocation4], 1 }

</bundles_post_ra>
